<compile_context>
chip_gen: v7x
topology: tpu7x:2x2x1
jax: 0.10.0
libtpu: 0.0.40
codegen_flags: <defaults>
</compile_context>

<pallas_src>
import functools

import jax
import jax.numpy as jnp
import numpy as np
from jax.experimental import pallas as pl
from jax.experimental.pallas import tpu as pltpu


def _pick_tile(m, candidates=(2048, 1024, 512, 256, 128, 64, 32, 16, 8)):
    """Largest candidate row-tile (multiple of 8) dividing m with >=2 tiles."""
    for t in candidates:
        if m % t == 0 and m // t >= 2:
            return t
    return m


def conv_stats_kernel(lhs_ref, w_ref, y_ref, sum_ref, ssq_ref):
    """One row tile: fused 9-tap deconv matmul + per-tile BN partial stats.

    lhs_ref : (TM, 9*Cin)   im2col rows (one row per input pixel)
    w_ref   : (9*Cin, 4*Cout) phase-fused deconv weight
    y_ref   : (TM, 4*Cout)  conv output (all 4 sub-pixel phases)
    sum_ref : (1, 4*Cout)   per-tile channel sum       (squeezed grid dim)
    ssq_ref : (1, 4*Cout)   per-tile channel sum of sq (squeezed grid dim)
    """
    y = jnp.dot(lhs_ref[...], w_ref[...], preferred_element_type=jnp.float32)
    y_ref[...] = y
    sum_ref[...] = jnp.sum(y, axis=0, keepdims=True)
    ssq_ref[...] = jnp.sum(y * y, axis=0, keepdims=True)


def bn_relu_kernel(y_ref, scale_ref, shift_ref, o_ref):
    """Lane-dense fused BN affine + ReLU epilogue: max(y*scale + shift, 0)."""
    o_ref[...] = jnp.maximum(y_ref[...] * scale_ref[...] + shift_ref[...], 0.0)


def up_forward(x1, x2, w_deconv, gamma, beta, *, eps=1e-5,
               compute_dtype=jnp.float32):
    """x1, x2: NCHW float32. w_deconv: (in_c, out_c, 4, 4) torch layout.

    compute_dtype: set to jnp.bfloat16 on v6e/v7x for full-rate MXU
    (f32 accumulation and f32 BN/ReLU are kept either way).
    """
    x = jnp.concatenate([x1, x2], axis=1)              # (N, Cin, H, W)
    N, Cin, H, W = x.shape
    Cout = w_deconv.shape[1]
    M = N * H * W
    K9 = 9 * Cin
    P = 4 * Cout                                        # (phase, Cout) columns

    # NCHW -> NHWC, pad spatial by 1 (the deconv's padding=1).
    x_nhwc = jnp.transpose(x, (0, 2, 3, 1))
    xp = jnp.pad(x_nhwc, ((0, 0), (1, 1), (1, 1), (0, 0)))

    # 9-tap im2col done once in XLA so the kernel sees a dense LHS and does a
    # single matmul per tile (no 16 narrow in-kernel slice/reshape copies).
    taps = [xp[:, dy:dy + H, dx:dx + W, :] for dy in range(3) for dx in range(3)]
    lhs = jnp.concatenate(taps, axis=-1).reshape(M, K9)

    # Deconv weight reorg: output pixel (2*jy+py, 2*jx+px) reads padded-input
    # tap (py+sy, px+sx) through kernel element (3-py-2*sy, 3-px-2*sx).
    w9 = jnp.zeros((K9, P), jnp.float32)
    for py in range(2):
        for px in range(2):
            for sy in range(2):
                for sx in range(2):
                    tap = (py + sy) * 3 + (px + sx)
                    phase = 2 * py + px
                    w9 = w9.at[tap * Cin:(tap + 1) * Cin,
                               phase * Cout:(phase + 1) * Cout].set(
                        w_deconv[:, :, 3 - py - 2 * sy, 3 - px - 2 * sx])

    lhs_c = lhs.astype(compute_dtype)
    w9_c = w9.astype(compute_dtype)

    # ---- pass 1: gridded fused matmul + streamed BN partial stats ----
    TM = _pick_tile(M)
    G = M // TM
    y, psum, pssq = pl.pallas_call(
        conv_stats_kernel,
        grid=(G,),
        in_specs=[
            pl.BlockSpec((TM, K9), lambda i: (i, 0)),
            pl.BlockSpec((K9, P), lambda i: (0, 0)),
        ],
        out_specs=[
            pl.BlockSpec((TM, P), lambda i: (i, 0)),
            pl.BlockSpec((None, 1, P), lambda i: (i, 0, 0)),
            pl.BlockSpec((None, 1, P), lambda i: (i, 0, 0)),
        ],
        out_shape=[
            jax.ShapeDtypeStruct((M, P), jnp.float32),
            jax.ShapeDtypeStruct((G, 1, P), jnp.float32),
            jax.ShapeDtypeStruct((G, 1, P), jnp.float32),
        ],
        compiler_params=pltpu.CompilerParams(
            dimension_semantics=("parallel",)),
    )(lhs_c, w9_c)

    # ---- fold stats -> fused per-channel affine (scale, shift) ----
    # Batch stats over (N, 2H, 2W) == over all rows and all 4 phases.
    s_c = jnp.sum(psum, axis=(0, 1)).reshape(4, Cout).sum(axis=0)
    ss_c = jnp.sum(pssq, axis=(0, 1)).reshape(4, Cout).sum(axis=0)
    count = jnp.float32(4 * M)
    mean = s_c / count
    var = jnp.maximum(ss_c / count - mean * mean, 0.0)   # single-pass variance
    inv = jax.lax.rsqrt(var + eps)
    scale_c = gamma.astype(jnp.float32) * inv
    shift_c = beta.astype(jnp.float32) - mean * scale_c
    scale_p = jnp.tile(scale_c, 4)                       # column layout (phase, c)
    shift_p = jnp.tile(shift_c, 4)

    # ---- pass 2: lane-dense BN affine + ReLU epilogue ----
    # Fold rows into lanes (metadata-only reshape of the contiguous (M, P)
    # buffer) so the stored last dim is a multiple of 128 -> unmasked stores.
    f = int(128 // np.gcd(P, 128))
    if M % f == 0:
        L, rows2 = f * P, M // f
    else:
        f, L, rows2 = 1, P, M
    y2 = y.reshape(rows2, L)
    scale_l = jnp.tile(scale_p, f).reshape(1, L)
    shift_l = jnp.tile(shift_p, f).reshape(1, L)

    TE = _pick_tile(rows2)
    G2 = rows2 // TE
    o2 = pl.pallas_call(
        bn_relu_kernel,
        grid=(G2,),
        in_specs=[
            pl.BlockSpec((TE, L), lambda i: (i, 0)),
            pl.BlockSpec((1, L), lambda i: (0, 0)),
            pl.BlockSpec((1, L), lambda i: (0, 0)),
        ],
        out_specs=pl.BlockSpec((TE, L), lambda i: (i, 0)),
        out_shape=jax.ShapeDtypeStruct((rows2, L), jnp.float32),
        compiler_params=pltpu.CompilerParams(
            dimension_semantics=("parallel",)),
    )(y2, scale_l, shift_l)

    # ---- interleave sub-pixel phases, return NCHW (PyTorch convention) ----
    y6 = o2.reshape(N, H, W, 2, 2, Cout)                 # (n, jy, jx, py, px, c)
    y_nhwc = jnp.transpose(y6, (0, 1, 3, 2, 4, 5)).reshape(N, 2 * H, 2 * W, Cout)
    # TODO(synk): keep NHWC for downstream consumers to avoid this final
    # transpose (full HBM round-trip); NCHW kept here to match the module API.
    return jnp.transpose(y_nhwc, (0, 3, 1, 2))


def up_reference(x1, x2, w_deconv, gamma, beta, *, eps=1e-5):
    """Pure-JAX reference (lax conv with lhs_dilation) for validation."""
    x = jnp.concatenate([x1, x2], axis=1)
    x_nhwc = jnp.transpose(x, (0, 2, 3, 1))
    # ConvTranspose2d == conv with flipped kernel, lhs_dilation=2, pad=k-1-p=2.
    w_hwio = jnp.transpose(w_deconv[:, :, ::-1, ::-1], (2, 3, 0, 1))
    y = jax.lax.conv_general_dilated(
        x_nhwc, w_hwio, window_strides=(1, 1), padding=((2, 2), (2, 2)),
        lhs_dilation=(2, 2), rhs_dilation=(1, 1),
        dimension_numbers=('NHWC', 'HWIO', 'NHWC'),
        precision=jax.lax.Precision.HIGHEST)
    mean = jnp.mean(y, axis=(0, 1, 2), keepdims=True)
    var = jnp.mean((y - mean) ** 2, axis=(0, 1, 2), keepdims=True)
    yn = (y - mean) * jax.lax.rsqrt(var + eps) * gamma + beta
    yr = jnp.maximum(yn, 0.0)
    return jnp.transpose(yr, (0, 3, 1, 2))


if __name__ == "__main__":
    key = jax.random.PRNGKey(0)
    k1, k2, k3 = jax.random.split(key, 3)

    N, C1, C2, H, W = 2, 4, 4, 16, 16
    in_c, out_c = C1 + C2, 16

    x1 = jax.random.normal(k1, (N, C1, H, W), jnp.float32)
    x2 = jax.random.normal(k2, (N, C2, H, W), jnp.float32)

    # Deterministic synthetic parameters (shapes from the module __init__).
    w_deconv = 0.1 * jax.random.normal(k3, (in_c, out_c, 4, 4), jnp.float32)
    gamma = jnp.ones((out_c,), jnp.float32)   # fresh BatchNorm2d defaults
    beta = jnp.zeros((out_c,), jnp.float32)

    fwd = jax.jit(functools.partial(up_forward, eps=1e-5))
    out = jax.block_until_ready(fwd(x1, x2, w_deconv, gamma, beta))
    assert out.shape == (N, out_c, 2 * H, 2 * W), out.shape

    ref = jax.block_until_ready(up_reference(x1, x2, w_deconv, gamma, beta))
    np.testing.assert_allclose(np.asarray(out), np.asarray(ref),
                               rtol=1e-3, atol=1e-3)

    print("KERNEL_OK")
</pallas_src>

<mosaic_0001>
module attributes {stable_mosaic.version = 11 : i64} {
  func.func @conv_stats_kernel(%arg0: i32, %arg1: memref<256x72xf32, #tpu.memory_space<vmem>>, %arg2: memref<72x64xf32, #tpu.memory_space<vmem>>, %arg3: memref<256x64xf32, #tpu.memory_space<vmem>>, %arg4: memref<1x1x64xf32, #tpu.memory_space<vmem>>, %arg5: memref<1x1x64xf32, #tpu.memory_space<vmem>>) attributes {dimension_semantics = [#tpu.dimension_semantics<parallel>], iteration_bounds = array<i64: 2>, scalar_prefetch = 0 : i64, scratch_operands = 0 : i64, tpu.core_type = #tpu.core_type<tc>, window_params = [{transform_indices = @transform_0, window_bounds = array<i64: 256, 72>}, {pipeline_mode = #tpu.pipeline_mode<synchronous>, transform_indices = @transform_1, window_bounds = array<i64: 72, 64>}, {transform_indices = @transform_2, window_bounds = array<i64: 256, 64>}, {transform_indices = @transform_3, window_bounds = array<i64: 1, 1, 64>}, {transform_indices = @transform_4, window_bounds = array<i64: 1, 1, 64>}]} {
    %c0 = arith.constant 0 : index
    %c0_0 = arith.constant 0 : index
    %0 = vector.load %arg1[%c0, %c0_0] : memref<256x72xf32, #tpu.memory_space<vmem>>, vector<256x72xf32>
    %c0_1 = arith.constant 0 : index
    %c0_2 = arith.constant 0 : index
    %1 = vector.load %arg2[%c0_1, %c0_2] : memref<72x64xf32, #tpu.memory_space<vmem>>, vector<72x64xf32>
    %cst = arith.constant dense<0.000000e+00> : vector<256x64xf32>
    %2 = tpu.matmul %0, %1, %cst {dimension_numbers = #tpu.dot_dimension_numbers<[1], [0], [0], [1], [0, 0, 1, 1], [], []>} : vector<256x72xf32>, vector<72x64xf32>, vector<256x64xf32> -> vector<256x64xf32>
    %c0_3 = arith.constant 0 : index
    %c0_4 = arith.constant 0 : index
    %3 = vector.load %arg3[%c0_3, %c0_4] : memref<256x64xf32, #tpu.memory_space<vmem>>, vector<256x64xf32>
    tpu.vector_store %arg3[%c0_3, %c0_4], %2 {strides = array<i32>} : memref<256x64xf32, #tpu.memory_space<vmem>>, vector<256x64xf32>,
    %cst_5 = arith.constant dense<0.000000e+00> : vector<64xf32>
    %4 = vector.multi_reduction <add>, %2, %cst_5 [0] : vector<256x64xf32> to vector<64xf32>
    %5 = vector.shape_cast %4 : vector<64xf32> to vector<1x64xf32>
    %c0_6 = arith.constant 0 : index
    %c0_7 = arith.constant 0 : index
    %c0_8 = arith.constant 0 : index
    %6 = vector.load %arg4[%c0_6, %c0_7, %c0_8] : memref<1x1x64xf32, #tpu.memory_space<vmem>>, vector<1x1x64xf32>
    %7 = vector.shape_cast %6 : vector<1x1x64xf32> to vector<1x64xf32>
    %8 = vector.shape_cast %5 : vector<1x64xf32> to vector<1x1x64xf32>
    tpu.vector_store %arg4[%c0_6, %c0_7, %c0_8], %8 {strides = array<i32>} : memref<1x1x64xf32, #tpu.memory_space<vmem>>, vector<1x1x64xf32>,
    %9 = arith.mulf %2, %2 : vector<256x64xf32>
    %cst_9 = arith.constant dense<0.000000e+00> : vector<64xf32>
    %10 = vector.multi_reduction <add>, %9, %cst_9 [0] : vector<256x64xf32> to vector<64xf32>
    %11 = vector.shape_cast %10 : vector<64xf32> to vector<1x64xf32>
    %c0_10 = arith.constant 0 : index
    %c0_11 = arith.constant 0 : index
    %c0_12 = arith.constant 0 : index
    %12 = vector.load %arg5[%c0_10, %c0_11, %c0_12] : memref<1x1x64xf32, #tpu.memory_space<vmem>>, vector<1x1x64xf32>
    %13 = vector.shape_cast %12 : vector<1x1x64xf32> to vector<1x64xf32>
    %14 = vector.shape_cast %11 : vector<1x64xf32> to vector<1x1x64xf32>
    tpu.vector_store %arg5[%c0_10, %c0_11, %c0_12], %14 {strides = array<i32>} : memref<1x1x64xf32, #tpu.memory_space<vmem>>, vector<1x1x64xf32>,
    return
  }
  func.func @transform_0(%arg0: i32) -> (i32, i32) {
    %c0_i32 = arith.constant 0 : i32
    %c0_i32_0 = arith.constant 0 : i32
    return %arg0, %c0_i32 : i32, i32
  }
  func.func @transform_1(%arg0: i32) -> (i32, i32) {
    %c0_i32 = arith.constant 0 : i32
    %c0_i32_0 = arith.constant 0 : i32
    %c0_i32_1 = arith.constant 0 : i32
    return %c0_i32, %c0_i32_0 : i32, i32
  }
  func.func @transform_2(%arg0: i32) -> (i32, i32) {
    %c0_i32 = arith.constant 0 : i32
    %c0_i32_0 = arith.constant 0 : i32
    return %arg0, %c0_i32 : i32, i32
  }
  func.func @transform_3(%arg0: i32) -> (i32, i32, i32) {
    %c0_i32 = arith.constant 0 : i32
    %c0_i32_0 = arith.constant 0 : i32
    %c0_i32_1 = arith.constant 0 : i32
    return %arg0, %c0_i32, %c0_i32_0 : i32, i32, i32
  }
  func.func @transform_4(%arg0: i32) -> (i32, i32, i32) {
    %c0_i32 = arith.constant 0 : i32
    %c0_i32_0 = arith.constant 0 : i32
    %c0_i32_1 = arith.constant 0 : i32
    return %arg0, %c0_i32, %c0_i32_0 : i32, i32, i32
  }
}

module attributes {stable_mosaic.version = 11 : i64} {
  func.func @bn_relu_kernel(%arg0: i32, %arg1: memref<128x128xf32, #tpu.memory_space<vmem>>, %arg2: memref<1x128xf32, #tpu.memory_space<vmem>>, %arg3: memref<1x128xf32, #tpu.memory_space<vmem>>, %arg4: memref<128x128xf32, #tpu.memory_space<vmem>>) attributes {dimension_semantics = [#tpu.dimension_semantics<parallel>], iteration_bounds = array<i64: 2>, scalar_prefetch = 0 : i64, scratch_operands = 0 : i64, tpu.core_type = #tpu.core_type<tc>, window_params = [{transform_indices = @transform_0, window_bounds = array<i64: 128, 128>}, {pipeline_mode = #tpu.pipeline_mode<synchronous>, transform_indices = @transform_1, window_bounds = array<i64: 1, 128>}, {pipeline_mode = #tpu.pipeline_mode<synchronous>, transform_indices = @transform_2, window_bounds = array<i64: 1, 128>}, {transform_indices = @transform_3, window_bounds = array<i64: 128, 128>}]} {
    %c0 = arith.constant 0 : index
    %c0_0 = arith.constant 0 : index
    %0 = vector.load %arg1[%c0, %c0_0] : memref<128x128xf32, #tpu.memory_space<vmem>>, vector<128x128xf32>
    %c0_1 = arith.constant 0 : index
    %c0_2 = arith.constant 0 : index
    %1 = vector.load %arg2[%c0_1, %c0_2] : memref<1x128xf32, #tpu.memory_space<vmem>>, vector<1x128xf32>
    %2 = vector.broadcast %1 : vector<1x128xf32> to vector<128x128xf32>
    %3 = arith.mulf %0, %2 : vector<128x128xf32>
    %c0_3 = arith.constant 0 : index
    %c0_4 = arith.constant 0 : index
    %4 = vector.load %arg3[%c0_3, %c0_4] : memref<1x128xf32, #tpu.memory_space<vmem>>, vector<1x128xf32>
    %5 = vector.broadcast %4 : vector<1x128xf32> to vector<128x128xf32>
    %6 = arith.addf %3, %5 : vector<128x128xf32>
    %cst = arith.constant 0.000000e+00 : f32
    %7 = vector.broadcast %cst : f32 to vector<128x128xf32>
    %8 = arith.maximumf %6, %7 : vector<128x128xf32>
    %c0_5 = arith.constant 0 : index
    %c0_6 = arith.constant 0 : index
    %9 = vector.load %arg4[%c0_5, %c0_6] : memref<128x128xf32, #tpu.memory_space<vmem>>, vector<128x128xf32>
    tpu.vector_store %arg4[%c0_5, %c0_6], %8 {strides = array<i32>} : memref<128x128xf32, #tpu.memory_space<vmem>>, vector<128x128xf32>,
    return
  }
  func.func @transform_0(%arg0: i32) -> (i32, i32) {
    %c0_i32 = arith.constant 0 : i32
    %c0_i32_0 = arith.constant 0 : i32
    return %arg0, %c0_i32 : i32, i32
  }
  func.func @transform_1(%arg0: i32) -> (i32, i32) {
    %c0_i32 = arith.constant 0 : i32
    %c0_i32_0 = arith.constant 0 : i32
    %c0_i32_1 = arith.constant 0 : i32
    return %c0_i32, %c0_i32_0 : i32, i32
  }
  func.func @transform_2(%arg0: i32) -> (i32, i32) {
    %c0_i32 = arith.constant 0 : i32
    %c0_i32_0 = arith.constant 0 : i32
    %c0_i32_1 = arith.constant 0 : i32
    return %c0_i32, %c0_i32_0 : i32, i32
  }
  func.func @transform_3(%arg0: i32) -> (i32, i32) {
    %c0_i32 = arith.constant 0 : i32
    %c0_i32_0 = arith.constant 0 : i32
    return %arg0, %c0_i32 : i32, i32
  }
}

</mosaic_0001>

<bundles_post_ra>
// kernel: tile.21
= control target key start
LH: loop header
LB: loop body
LE: loop exit
PB: predicated region body
PF: predicated region fallthrough
CT: control target
= control target key end

     0   :  { %s22_s0 = inlined_call_operand.vmem [shape: f32[16], index: 0, kind: input, shape index: {}]   ;;  %s23_s1 = inlined_call_operand.vmem [shape: f32[4,16], index: 1, kind: output, shape index: {}]  }
   0x1   :  { %v4_v0 = vld [vmem:[%s22_s0] ss:$0 sm:$0xff] }
   0x2   :  { %5 = vst [vmem:[%s23_s1] sm:$0xf] %v4_v0 }

// kernel: tile.28
= control target key start
LH: loop header
LB: loop body
LE: loop exit
PB: predicated region body
PF: predicated region fallthrough
CT: control target
= control target key end

     0   :  { %vm7_vm0 = vcmask 130048   ;;  %s37_s8 = smov 16   ;;  %s38_s9 = smov 32   ;;  %vm13_vm1 = vcmask 523648   ;;  %vm19_vm2 = vcmask 392448   ;;  %vm25_vm3 = vcmask 261248   ;;  %s55_s0 = inlined_call_operand.vmem [shape: f32[4,16], index: 0, kind: input, shape index: {}]   ;;  %s56_s1 = inlined_call_operand.vmem [shape: f32[64], index: 1, kind: output, shape index: {}]  }
   0x1   :  { %v4_v0 = vld [vmem:[%s55_s0] sm:$0xf]  ;;  %s36_s0 = smov 48  }
   0x2   :  { %5 = vst [vmem:[#allocation1] sm:$0xf] %v4_v0 }
   0x9   :  { %v10_v1 = vld [vmem:[#allocation1 + $0x3] sm:$0x1]   ;;  %v22_v2 = vld [vmem:[#allocation1 + $0x1] sm:$0x1]   ;;  %v6_v3 = vld [vmem:[#allocation1] sm:$0x1]  }
   0xa   :  { %11 = vrot.lane.b32.xlu0 %v10_v1, %s36_s0  ;;  %23 = vrot.lane.b32.xlu1 %v22_v2, %s37_s8  ;;  %v16_v4 = vld [vmem:[#allocation1 + $0x2] sm:$0x1]   ;;  %8 = vst.msk [vmem:[#allocation0] sm:$0x1] %vm7_vm0, %v6_v3  }
   0xe   :  { %17 = vrot.lane.b32.xlu0 %v16_v4, %s38_s9 }
  0x7c   :  { %v12_v5 = vpop.permute.xlu0 %11   ;;  %v24_v6 = vpop.permute.xlu1 %23  }
  0x7d   :  { %14 = vst.msk [vmem:[#allocation0] sm:$0x1] %vm13_vm1, %v12_v5  }
  0x80   :  { %v18_v7 = vpop.permute.xlu0 %17  }
  0x81   :  { %20 = vst.msk [vmem:[#allocation0] sm:$0x1] %vm19_vm2, %v18_v7  }
  0x82   :  { %26 = vst.msk [vmem:[#allocation0] sm:$0x1] %vm25_vm3, %v24_v6  }
  0x89   :  { %v30_v8 = vld [vmem:[#allocation0] sm:$0x1] }
  0x8a   :  { %32 = vst [vmem:[%s56_s1] sm:$0x1] %v30_v8 }

// kernel: tile.29
= control target key start
LH: loop header
LB: loop body
LE: loop exit
PB: predicated region body
PF: predicated region fallthrough
CT: control target
= control target key end

     0   :  { %s22_s0 = inlined_call_operand.vmem [shape: f32[64], index: 0, kind: input, shape index: {}]   ;;  %s23_s1 = inlined_call_operand.vmem [shape: f32[2,64], index: 1, kind: output, shape index: {}]  }
   0x1   :  { %v4_v0 = vld [vmem:[%s22_s0] ss:$0 sm:$0xff] }
   0x2   :  { %5 = vst [vmem:[%s23_s1] sm:$0x3] %v4_v0 }

// kernel: tile.30
= control target key start
LH: loop header
LB: loop body
LE: loop exit
PB: predicated region body
PF: predicated region fallthrough
CT: control target
= control target key end

     0   :  { %vm7_vm0 = vcmask 523264   ;;  %vm13_vm1 = vcmask 1048064   ;;  %s39_s0 = inlined_call_operand.vmem [shape: f32[2,64], index: 0, kind: input, shape index: {}]   ;;  %s40_s1 = inlined_call_operand.vmem [shape: f32[1,128], index: 1, kind: output, shape index: {}]  }
   0x1   :  { %v4_v0 = vld [vmem:[%s39_s0] sm:$0x3]  ;;  %s22_s0 = smov 64  }
   0x2   :  { %5 = vst [vmem:[#allocation1] sm:$0x3] %v4_v0 }
   0x9   :  { %v10_v1 = vld [vmem:[#allocation1 + $0x1] sm:$0x1]   ;;  %v6_v2 = vld [vmem:[#allocation1] sm:$0x1]  }
   0xa   :  { %11 = vrot.lane.b32.xlu0 %v10_v1, %s22_s0  ;;  %8 = vst.msk [vmem:[#allocation0] sm:$0x1] %vm7_vm0, %v6_v2  }
  0x7c   :  { %v12_v3 = vpop.permute.xlu0 %11  }
  0x7d   :  { %14 = vst.msk [vmem:[#allocation0] sm:$0x1] %vm13_vm1, %v12_v3  }
  0x84   :  { %v18_v4 = vld [vmem:[#allocation0] sm:$0x1] }
  0x85   :  { %20 = vst [vmem:[%s40_s1] sm:$0x1] %v18_v4 }

// kernel: up_forward.3
= control target key start
LH: loop header
LB: loop body
LE: loop exit
PB: predicated region body
PF: predicated region fallthrough
CT: control target
= control target key end

     0   :  { %s373_s12 = smov 0   ;;  %s468_s0 = inlined_call_operand.vmem [shape: f32[256,128], index: 0, kind: input, shape index: {}]   ;;  %s469_s1 = inlined_call_operand.vmem [shape: f32[1,128], index: 1, kind: input, shape index: {}]   ;;  %s470_s2 = inlined_call_operand.vmem [shape: f32[1,128], index: 2, kind: input, shape index: {}]   ;;  %s471_s3 = inlined_call_operand.vmem [shape: f32[256,128], index: 3, kind: output, shape index: {}]  }
   0x1 LB: > { %s324_s13 = sadd.s32 4294967295, %s351_s12   ;;  %p328_p0 = scmp.ge.s32.totalorder %s351_s12, 1  ;;  %s351_s12 = sphi %s373_s12, %s13_s12  }
   0x2   : > { %p138_p1 = scmp.lt.s32.totalorder %s351_s12, 3 }
   0x4   : > { %p139_p2 = pnand %p328_p0, %p138_p1 }
   0x5   : > { %s329_s14 = sshll.u32 (!%p139_p2), %s324_s13, 4  ;;  %v384_v0 = vld [vmem:[%s469_s1] ss:$0 sm:$0xff] (!%p139_p2) }
   0x6   : > { %142 = sbr.rel (%p139_p2) target bundleno = 34 (0x22), region = 32  ;;  %p163_p3 = scmp.lt.s32.totalorder (!%p139_p2), %s329_s14, 31  ;;  %v394_v1 = vld [vmem:[%s470_s2] ss:$0 sm:$0xff] (!%p139_p2) }
   0xd   : > { %s473_s14 = smov (!%p163_p3, %s329_s14), 31 }
   0xe   : > { %s330_s15 = sshll.u32 %s473_s14, 3 }
   0xf   : > { %s389_s20 = scalar_lea.vmem %s468_s0, %s330_s15  ;;  %s417_s25 = scalar_lea.vmem %s471_s3, %s330_s15 }
  0x10   : > { %v174_v2 = vld [vmem:[%s389_s20] sm:$0xff]  ;;  %v175_v3 = vld [vmem:[%s389_s20 + $0x8] sm:$0xff]  ;;  %v176_v4 = vld [vmem:[%s389_s20 + $0x10] sm:$0xff] }
  0x11   : > { %v197_v5 = vmul.f32 %v384_v0, %v174_v2  ;;  %v198_v6 = vmul.f32 %v384_v0, %v175_v3  ;;  %v199_v7 = vmul.f32 %v384_v0, %v176_v4  ;;  %v177_v8 = vld [vmem:[%s389_s20 + $0x18] sm:$0xff]  ;;  %v178_v9 = vld [vmem:[%s389_s20 + $0x20] sm:$0xff]  ;;  %v179_v10 = vld [vmem:[%s389_s20 + $0x28] sm:$0xff] }
  0x12   : > { %v200_v11 = vmul.f32 %v384_v0, %v177_v8  ;;  %v201_v12 = vmul.f32 %v384_v0, %v178_v9  ;;  %v202_v13 = vmul.f32 %v384_v0, %v179_v10  ;;  %v180_v14 = vld [vmem:[%s389_s20 + $0x30] sm:$0xff]  ;;  %v181_v15 = vld [vmem:[%s389_s20 + $0x38] sm:$0xff]  ;;  %v182_v24 = vld [vmem:[%s389_s20 + $0x40] sm:$0xff] }
  0x13   : > { %v220_v16 = vadd.f32 %v394_v1, %v197_v5  ;;  %v221_v17 = vadd.f32 %v394_v1, %v198_v6  ;;  %v222_v18 = vadd.f32 %v394_v1, %v199_v7  ;;  %v203_v19 = vmul.f32 %v384_v0, %v180_v14  ;;  %v183_v25 = vld [vmem:[%s389_s20 + $0x48] sm:$0xff]  ;;  %v184_v26 = vld [vmem:[%s389_s20 + $0x50] sm:$0xff]  ;;  %v185_v31 = vld [vmem:[%s389_s20 + $0x58] sm:$0xff] }
  0x14   : > { %v223_v20 = vadd.f32 %v394_v1, %v200_v11  ;;  %v224_v21 = vadd.f32 %v394_v1, %v201_v12  ;;  %v225_v22 = vadd.f32 %v394_v1, %v202_v13  ;;  %v204_v23 = vmul.f32 %v384_v0, %v181_v15  ;;  %v186_v32 = vld [vmem:[%s389_s20 + $0x60] sm:$0xff]  ;;  %v187_v33 = vld [vmem:[%s389_s20 + $0x68] sm:$0xff]  ;;  %v188_v38 = vld [vmem:[%s389_s20 + $0x70] sm:$0xff] }
  0x15   : > { %v236_v27 = vmax.f32 %v220_v16, 0.0  ;;  %v237_v28 = vmax.f32 %v221_v17, 0.0  ;;  %v238_v29 = vmax.f32 %v222_v18, 0.0  ;;  %v226_v30 = vadd.f32 %v394_v1, %v203_v19  ;;  %v189_v43 = vld [vmem:[%s389_s20 + $0x78] sm:$0xff] }
  0x16   : > { %v239_v34 = vmax.f32 %v223_v20, 0.0  ;;  %v240_v35 = vmax.f32 %v224_v21, 0.0  ;;  %v241_v36 = vmax.f32 %v225_v22, 0.0  ;;  %v227_v37 = vadd.f32 %v394_v1, %v204_v23 }
  0x17   : > { %252 = vst [vmem:[%s417_s25] sm:$0xff] %v236_v27  ;;  %253 = vst [vmem:[%s417_s25 + $0x8] sm:$0xff] %v237_v28  ;;  %v242_v39 = vmax.f32 %v226_v30, 0.0  ;;  %v205_v40 = vmul.f32 %v384_v0, %v182_v24  ;;  %v206_v41 = vmul.f32 %v384_v0, %v183_v25  ;;  %v207_v42 = vmul.f32 %v384_v0, %v184_v26 }
  0x18   : > { %254 = vst [vmem:[%s417_s25 + $0x10] sm:$0xff] %v238_v29  ;;  %255 = vst [vmem:[%s417_s25 + $0x18] sm:$0xff] %v239_v34  ;;  %v243_v44 = vmax.f32 %v227_v37, 0.0  ;;  %v208_v45 = vmul.f32 %v384_v0, %v185_v31  ;;  %v209_v46 = vmul.f32 %v384_v0, %v186_v32  ;;  %v210_v47 = vmul.f32 %v384_v0, %v187_v33 }
  0x19   : > { %256 = vst [vmem:[%s417_s25 + $0x20] sm:$0xff] %v240_v35  ;;  %257 = vst [vmem:[%s417_s25 + $0x28] sm:$0xff] %v241_v36  ;;  %v228_v48 = vadd.f32 %v394_v1, %v205_v40  ;;  %v229_v49 = vadd.f32 %v394_v1, %v206_v41  ;;  %v230_v50 = vadd.f32 %v394_v1, %v207_v42 }
  0x1a   : > { %258 = vst [vmem:[%s417_s25 + $0x30] sm:$0xff] %v242_v39  ;;  %v211_v51 = vmul.f32 %v384_v0, %v188_v38  ;;  %259 = vst [vmem:[%s417_s25 + $0x38] sm:$0xff] %v243_v44  ;;  %v231_v52 = vadd.f32 %v394_v1, %v208_v45  ;;  %v232_v53 = vadd.f32 %v394_v1, %v209_v46 }
  0x1b   : > { %v233_v54 = vadd.f32 %v394_v1, %v210_v47  ;;  %v212_v55 = vmul.f32 %v384_v0, %v189_v43  ;;  %v244_v56 = vmax.f32 %v228_v48, 0.0  ;;  %v245_v57 = vmax.f32 %v229_v49, 0.0 }
  0x1c   : > { %v246_v58 = vmax.f32 %v230_v50, 0.0  ;;  %v234_v59 = vadd.f32 %v394_v1, %v211_v51  ;;  %v247_v60 = vmax.f32 %v231_v52, 0.0  ;;  %v248_v61 = vmax.f32 %v232_v53, 0.0 }
  0x1d   : > { %v249_v62 = vmax.f32 %v233_v54, 0.0  ;;  %v235_v63 = vadd.f32 %v394_v1, %v212_v55  ;;  %260 = vst [vmem:[%s417_s25 + $0x40] sm:$0xff] %v244_v56  ;;  %261 = vst [vmem:[%s417_s25 + $0x48] sm:$0xff] %v245_v57 }
  0x1e   : > { %262 = vst [vmem:[%s417_s25 + $0x50] sm:$0xff] %v246_v58  ;;  %v250_v2 = vmax.f32 %v234_v59, 0.0  ;;  %263 = vst [vmem:[%s417_s25 + $0x58] sm:$0xff] %v247_v60 }
  0x1f   : > { %264 = vst [vmem:[%s417_s25 + $0x60] sm:$0xff] %v248_v61  ;;  %265 = vst [vmem:[%s417_s25 + $0x68] sm:$0xff] %v249_v62  ;;  %v251_v0 = vmax.f32 %v235_v63, 0.0 }
  0x20   : > { %266 = vst [vmem:[%s417_s25 + $0x70] sm:$0xff] %v250_v2 }
  0x21   : > { %267 = vst [vmem:[%s417_s25 + $0x78] sm:$0xff] %v251_v0 }
  0x22 PF: > { %s13_s12 = sadd.s32 1, %s351_s12  }
  0x23   : > { %p10_p4 = scmp.ge.s32.totalorder %s13_s12, 4  }
  0x25   :  { %12 = sbr.rel (!%p10_p4) target bundleno = 1 (0x1), region = 62 }

// kernel: up_forward.2
= control target key start
LH: loop header
LB: loop body
LE: loop exit
PB: predicated region body
PF: predicated region fallthrough
CT: control target
= control target key end

     0   :  { %s1110_s15 = smov 0   ;;  %s1467_s0 = inlined_call_operand.vmem [shape: f32[512,72], index: 0, kind: input, shape index: {}]   ;;  %s1468_s1 = inlined_call_operand.vmem [shape: f32[72,64], index: 1, kind: input, shape index: {}]   ;;  %s1469_s2 = inlined_call_operand.vmem [shape: f32[512,64], index: 2, kind: output, shape index: {0}]   ;;  %s1470_s3 = inlined_call_operand.vmem [shape: f32[2,1,64], index: 3, kind: output, shape index: {1}]   ;;  %s1471_s4 = inlined_call_operand.vmem [shape: f32[2,1,64], index: 4, kind: output, shape index: {2}]  }
   0x1 LB: > { %s1116_s16 = sadd.s32 4294967295, %s1083_s15   ;;  %p897_p0 = scmp.ge.s32.totalorder %s1083_s15, 1  ;;  %s1083_s15 = sphi %s1110_s15, %s15_s15  }
   0x2   : > { %p168_p1 = scmp.lt.s32.totalorder %s1083_s15, 3 }
   0x4   : > { %p169_p2 = pnand %p897_p0, %p168_p1 }
   0x5   : > { %v250_v0 = vld [vmem:[%s1468_s1] sm:$0xff] (!%p169_p2)  ;;  %v251_v1 = vld [vmem:[%s1468_s1 + $0x8] sm:$0xff] (!%p169_p2)  ;;  %v252_v2 = vld [vmem:[%s1468_s1 + $0x10] sm:$0xff] (!%p169_p2)  ;;  %s898_s23 = sshll.u32 (!%p169_p2), %s1116_s16, 5  ;;  %vm259_vm0 = vcmask (!%p169_p2), 588800   ;;  %vm581_vm1 = vcmask (!%p169_p2), 523264  }
   0x6   : > { %172 = sbr.rel (%p169_p2) target bundleno = 319 (0x13f), region = 28  ;;  %v1043_v3 = vpack.c.bf16 (!%p169_p2), %v251_v1, %v250_v0  ;;  %v253_v4 = vld [vmem:[%s1468_s1 + $0x18] sm:$0xff] (!%p169_p2)  ;;  %p201_p3 = scmp.lt.s32.totalorder (!%p169_p2), %s898_s23, 63  ;;  %v254_v6 = vld [vmem:[%s1468_s1 + $0x20] sm:$0xff] (!%p169_p2)  ;;  %v255_v7 = vld [vmem:[%s1468_s1 + $0x28] sm:$0xff] (!%p169_p2)  ;;  %vm683_vm2 = vcmask (!%p169_p2), 516096  }
   0x7   : > { %v1047_v5 = vpack.c.bf16 (!%p169_p2), %v253_v4, %v252_v2  ;;  %v1051_v8 = vpack.c.bf16 (!%p169_p2), %v255_v7, %v254_v6  ;;  %v256_v9 = vld [vmem:[%s1468_s1 + $0x30] sm:$0xff] (!%p169_p2)  ;;  %v257_v10 = vld [vmem:[%s1468_s1 + $0x38] sm:$0xff] (!%p169_p2)  ;;  %v258_v14 = vld [vmem:[%s1468_s1 + $0x40] sm:$0xff] (!%p169_p2)  ;;  %p212_p4 = scmp.lt.s32.totalorder (!%p169_p2), %s1116_s16, 1 }
   0x8   : > { %1044 = vmatprep.subr.bf16.mxu0 (!%p169_p2), %v1043_v3  ;;  %1059 = vmatprep.subr.bf16.mxu1 (!%p169_p2), %v1043_v3  ;;  %v1055_v12 = vpack.c.bf16 (!%p169_p2), %v257_v10, %v256_v9 }
   0x9   : > { %1046 = vmatpush3.bf16.msra.mxu0 (!%p169_p2), %v1043_v3  ;;  %1064 = vmatpush3.bf16.msra.mxu1 (!%p169_p2), %v1043_v3 }
   0xa   : > { %1048 = vmatprep.subr.bf16.mxu0 (!%p169_p2), %v1047_v5  ;;  %1060 = vmatprep.subr.bf16.mxu1 (!%p169_p2), %v1047_v5 }
   0xd   : > { %s1473_s23 = smov (!%p201_p3, %s898_s23), 63  ;;  %1050 = vmatpush3.bf16.msra.mxu0 %v1047_v5  ;;  %1065 = vmatpush3.bf16.msra.mxu1 %v1047_v5  ;;  %s1475_s16 = smov (!%p212_p4, %s1116_s16), 1 }
   0xe   : > { %s899_s30 = sshll.u32 %s1473_s23, 3  ;;  %1052 = vmatprep.subr.bf16.mxu0 %v1051_v8  ;;  %1061 = vmatprep.subr.bf16.mxu1 %v1051_v8  ;;  %s214_s21 = scalar_lea.vmem %s1470_s3, %s1475_s16 }
   0xf   : > { %s1153_s11 = scalar_lea.vmem %s1467_s0, %s899_s30  ;;  %s1227_s18 = scalar_lea.vmem %s1469_s2, %s899_s30 }
  0x10   : > { %v218_v11 = vld [vmem:[%s1153_s11] sm:$0xff]  ;;  %v219_v15 = vld [vmem:[%s1153_s11 + $0x8] sm:$0xff]  ;;  %v220_v16 = vld [vmem:[%s1153_s11 + $0x10] sm:$0xff]  ;;  %s217_s24 = scalar_lea.vmem %s1471_s4, %s1475_s16 }
  0x11   : > { %995 = vmatprep.mubr.msk.f32.mxu0 %vm259_vm0, %v218_v11  ;;  %1054 = vmatpush3.bf16.msra.mxu0 %v1051_v8  ;;  %v234_v13 = vld [vmem:[%s1153_s11 + $0x80] sm:$0xff]  ;;  %v235_v17 = vld [vmem:[%s1153_s11 + $0x88] sm:$0xff]  ;;  %v236_v18 = vld [vmem:[%s1153_s11 + $0x90] sm:$0xff] }
  0x12   : > { %1056 = vmatprep.subr.bf16.mxu0 %v1055_v12  ;;  %1066 = vmatpush3.bf16.msra.mxu1 %v1051_v8  ;;  %v221_v19 = vld [vmem:[%s1153_s11 + $0x18] sm:$0xff]  ;;  %v222_v20 = vld [vmem:[%s1153_s11 + $0x20] sm:$0xff]  ;;  %v223_v23 = vld [vmem:[%s1153_s11 + $0x28] sm:$0xff] }
  0x13   : > { %1062 = vmatprep.subr.bf16.mxu1 %v1055_v12  ;;  %1019 = vmatprep.mubr.msk.f32.mxu1 %vm259_vm0, %v234_v13  ;;  %v237_v21 = vld [vmem:[%s1153_s11 + $0x98] sm:$0xff]  ;;  %v238_v22 = vld [vmem:[%s1153_s11 + $0xa0] sm:$0xff]  ;;  %v224_v24 = vld [vmem:[%s1153_s11 + $0x30] sm:$0xff] }
  0x14   : > { %v239_v25 = vld [vmem:[%s1153_s11 + $0xa8] sm:$0xff]  ;;  %v240_v26 = vld [vmem:[%s1153_s11 + $0xb0] sm:$0xff]  ;;  %v225_v27 = vld [vmem:[%s1153_s11 + $0x38] sm:$0xff] }
  0x15   : > { %1058 = vmatpush3.bf16.msra.mxu0 %v1055_v12  ;;  %v226_v28 = vld [vmem:[%s1153_s11 + $0x40] sm:$0xff]  ;;  %v241_v29 = vld [vmem:[%s1153_s11 + $0xb8] sm:$0xff]  ;;  %v227_v31 = vld [vmem:[%s1153_s11 + $0x48] sm:$0xff] }
  0x16   : > { %993 = vmatprep.subr.mxu0 %v258_v14  ;;  %1067 = vmatpush3.bf16.msra.mxu1 %v1055_v12  ;;  %v242_v30 = vld [vmem:[%s1153_s11 + $0xc0] sm:$0xff]  ;;  %v228_v32 = vld [vmem:[%s1153_s11 + $0x50] sm:$0xff]  ;;  %v243_v33 = vld [vmem:[%s1153_s11 + $0xc8] sm:$0xff] }
  0x17   : > { %1063 = vmatprep.subr.mxu1 %v258_v14  ;;  %v244_v34 = vld [vmem:[%s1153_s11 + $0xd0] sm:$0xff]  ;;  %v229_v35 = vld [vmem:[%s1153_s11 + $0x58] sm:$0xff]  ;;  %v230_v36 = vld [vmem:[%s1153_s11 + $0x60] sm:$0xff] }
  0x18   : > { %v245_v37 = vld [vmem:[%s1153_s11 + $0xd8] sm:$0xff]  ;;  %v246_v38 = vld [vmem:[%s1153_s11 + $0xe0] sm:$0xff]  ;;  %v231_v39 = vld [vmem:[%s1153_s11 + $0x68] sm:$0xff] }
  0x19   : > { %994 = vmatpush3.msra.mxu0 %v258_v14  ;;  %v232_v40 = vld [vmem:[%s1153_s11 + $0x70] sm:$0xff]  ;;  %v247_v41 = vld [vmem:[%s1153_s11 + $0xe8] sm:$0xff]  ;;  %v233_v43 = vld [vmem:[%s1153_s11 + $0x78] sm:$0xff] }
  0x1a   : > { %996 = vmatmul.mubr.msk.f32.vlgmr.msra.gmra.mrb[0].mxu0 %vm259_vm0, %v219_v15  ;;  %1068 = vmatpush3.msra.mxu1 %v258_v14  ;;  %v248_v42 = vld [vmem:[%s1153_s11 + $0xf0] sm:$0xff]  ;;  %v249_v44 = vld [vmem:[%s1153_s11 + $0xf8] sm:$0xff] }
  0x1b   : > { %998 = vmatprep.mubr.msk.f32.mxu0 %vm259_vm0, %v220_v16  ;;  %1020 = vmatmul.mubr.msk.f32.vlgmr.msra.gmra.mrb[0].mxu1 %vm259_vm0, %v235_v17 }
  0x1c   : > { %1022 = vmatprep.mubr.msk.f32.mxu1 %vm259_vm0, %v236_v18 }
  0x1e   : > { %999 = vmatmul.mubr.msk.f32.gmra.mrb[2].mxu0 %vm259_vm0, %v221_v19 }
  0x1f   : > { %1001 = vmatprep.mubr.msk.f32.mxu0 %vm259_vm0, %v222_v20  ;;  %1023 = vmatmul.mubr.msk.f32.gmra.mrb[2].mxu1 %vm259_vm0, %v237_v21 }
  0x20   : > { %1025 = vmatprep.mubr.msk.f32.mxu1 %vm259_vm0, %v238_v22 }
  0x22   : > { %1002 = vmatmul.mubr.msk.f32.gmra.mrb[4].mxu0 %vm259_vm0, %v223_v23 }
  0x23   : > { %1004 = vmatprep.mubr.msk.f32.mxu0 %vm259_vm0, %v224_v24  ;;  %1026 = vmatmul.mubr.msk.f32.gmra.mrb[4].mxu1 %vm259_vm0, %v239_v25 }
  0x24   : > { %1028 = vmatprep.mubr.msk.f32.mxu1 %vm259_vm0, %v240_v26 }
  0x26   : > { %1005 = vmatmul.mubr.msk.f32.gmra.mrb[6].mxu0 %vm259_vm0, %v225_v27 }
  0x27   : > { %1007 = vmatprep.mubr.msk.f32.mxu0 %vm259_vm0, %v226_v28  ;;  %1029 = vmatmul.mubr.msk.f32.gmra.mrb[6].mxu1 %vm259_vm0, %v241_v29 }
  0x28   : > { %1031 = vmatprep.mubr.msk.f32.mxu1 %vm259_vm0, %v242_v30 }
  0x2a   : > { %1008 = vmatmul.mubr.msk.f32.gmra.mrb[8].mxu0 %vm259_vm0, %v227_v31 }
  0x2b   : > { %1010 = vmatprep.mubr.msk.f32.mxu0 %vm259_vm0, %v228_v32  ;;  %1032 = vmatmul.mubr.msk.f32.gmra.mrb[8].mxu1 %vm259_vm0, %v243_v33 }
  0x2c   : > { %1034 = vmatprep.mubr.msk.f32.mxu1 %vm259_vm0, %v244_v34 }
  0x2e   : > { %1011 = vmatmul.mubr.msk.f32.gmra.mrb[10].mxu0 %vm259_vm0, %v229_v35 }
  0x2f   : > { %1013 = vmatprep.mubr.msk.f32.mxu0 %vm259_vm0, %v230_v36  ;;  %1035 = vmatmul.mubr.msk.f32.gmra.mrb[10].mxu1 %vm259_vm0, %v245_v37 }
  0x30   : > { %1037 = vmatprep.mubr.msk.f32.mxu1 %vm259_vm0, %v246_v38 }
  0x32   : > { %1014 = vmatmul.mubr.msk.f32.gmra.mrb[12].mxu0 %vm259_vm0, %v231_v39 }
  0x33   : > { %1016 = vmatprep.mubr.msk.f32.mxu0 %vm259_vm0, %v232_v40  ;;  %1038 = vmatmul.mubr.msk.f32.gmra.mrb[12].mxu1 %vm259_vm0, %v247_v41 }
  0x34   : > { %1040 = vmatprep.mubr.msk.f32.mxu1 %vm259_vm0, %v248_v42 }
  0x36   : > { %1017 = vmatmul.mubr.msk.f32.gmra.mrb[14].mxu0 %vm259_vm0, %v233_v43 }
  0x37   : > { %1041 = vmatmul.mubr.msk.f32.gmra.mrb[14].mxu1 %vm259_vm0, %v249_v44 }
  0xed   : > { %v997_v45 = vpop.f32.mrb[0].mxu0 }
  0xee   : > { %583 = vst.msk [vmem:[%s1227_s18 + $0x8] sm:$0xff] %vm581_vm1, %v997_v45  ;;  %v615_v46 = vsel %vm581_vm1, %v997_v45, 0.0  ;;  %v686_v47 = vmul.f32 %v997_v45, %v997_v45  ;;  %v422_v48 = vpop.f32.mrb[1].mxu0  ;;  %v1232_v49 = vpop.f32.mrb[0].mxu1 }
  0xef   : > { %582 = vst.msk [vmem:[%s1227_s18] sm:$0xff] %vm581_vm1, %v422_v48  ;;  %v614_v50 = vsel %vm581_vm1, %v422_v48, 0.0  ;;  %v685_v51 = vmul.f32 %v422_v48, %v422_v48  ;;  %599 = vst.msk [vmem:[%s1227_s18 + $0x88] sm:$0xff] %vm581_vm1, %v1232_v49  ;;  %v1240_v52 = vpop.f32.mrb[1].mxu1 }
  0xf0   : > { %v718_v53 = vsel %vm581_vm1, %v686_v47, 0.0  ;;  %v616_v54 = vadd.f32 %v615_v46, %v614_v50  ;;  %598 = vst.msk [vmem:[%s1227_s18 + $0x80] sm:$0xff] %vm581_vm1, %v1240_v52 }
  0xf1   : > { %v717_v55 = vsel %vm581_vm1, %v685_v51, 0.0  ;;  %v1000_v56 = vpop.f32.mrb[2].mxu0 }
  0xf2   : > { %v719_v57 = vadd.f32 %v718_v53, %v717_v55  ;;  %585 = vst.msk [vmem:[%s1227_s18 + $0x18] sm:$0xff] %vm581_vm1, %v1000_v56  ;;  %v432_v58 = vpop.f32.mrb[3].mxu0  ;;  %v1249_v59 = vpop.f32.mrb[2].mxu1  ;;  %v688_v60 = vmul.f32 %v1000_v56, %v1000_v56  ;;  %v619_v1 = vsel %vm581_vm1, %v1000_v56, 0.0 }
  0xf3   : > { %584 = vst.msk [vmem:[%s1227_s18 + $0x10] sm:$0xff] %vm581_vm1, %v432_v58  ;;  %v617_v61 = vsel %vm581_vm1, %v432_v58, 0.0  ;;  %v687_v62 = vmul.f32 %v432_v58, %v432_v58  ;;  %601 = vst.msk [vmem:[%s1227_s18 + $0x98] sm:$0xff] %vm581_vm1, %v1249_v59  ;;  %v1257_v63 = vpop.f32.mrb[3].mxu1 }
  0xf4   : > { %v618_v0 = vadd.f32 %v617_v61, %v616_v54  ;;  %600 = vst.msk [vmem:[%s1227_s18 + $0x90] sm:$0xff] %vm581_vm1, %v1257_v63  ;;  %v722_v8 = vsel %vm581_vm1, %v688_v60, 0.0 }
  0xf5   : > { %v720_v2 = vsel %vm581_vm1, %v687_v62, 0.0  ;;  %v1003_v3 = vpop.f32.mrb[4].mxu0 }
  0xf6   : > { %v721_v4 = vadd.f32 %v720_v2, %v719_v57  ;;  %587 = vst.msk [vmem:[%s1227_s18 + $0x28] sm:$0xff] %vm581_vm1, %v1003_v3  ;;  %v442_v5 = vpop.f32.mrb[5].mxu0  ;;  %v620_v6 = vadd.f32 %v619_v1, %v618_v0  ;;  %v1266_v7 = vpop.f32.mrb[4].mxu1  ;;  %v690_v9 = vmul.f32 %v1003_v3, %v1003_v3  ;;  %v623_v15 = vsel %vm581_vm1, %v1003_v3, 0.0 }
  0xf7   : > { %586 = vst.msk [vmem:[%s1227_s18 + $0x20] sm:$0xff] %vm581_vm1, %v442_v5  ;;  %v621_v10 = vsel %vm581_vm1, %v442_v5, 0.0  ;;  %v689_v11 = vmul.f32 %v442_v5, %v442_v5  ;;  %603 = vst.msk [vmem:[%s1227_s18 + $0xa8] sm:$0xff] %vm581_vm1, %v1266_v7  ;;  %v1275_v12 = vpop.f32.mrb[5].mxu1 }
  0xf8   : > { %v622_v13 = vadd.f32 %v621_v10, %v620_v6  ;;  %v723_v14 = vadd.f32 %v722_v8, %v721_v4  ;;  %602 = vst.msk [vmem:[%s1227_s18 + $0xa0] sm:$0xff] %vm581_vm1, %v1275_v12  ;;  %v726_v22 = vsel %vm581_vm1, %v690_v9, 0.0 }
  0xf9   : > { %v724_v16 = vsel %vm581_vm1, %v689_v11, 0.0  ;;  %v1006_v17 = vpop.f32.mrb[6].mxu0 }
  0xfa   : > { %v725_v18 = vadd.f32 %v724_v16, %v723_v14  ;;  %589 = vst.msk [vmem:[%s1227_s18 + $0x38] sm:$0xff] %vm581_vm1, %v1006_v17  ;;  %v452_v19 = vpop.f32.mrb[7].mxu0  ;;  %v624_v20 = vadd.f32 %v623_v15, %v622_v13  ;;  %v1284_v21 = vpop.f32.mrb[6].mxu1  ;;  %v692_v23 = vmul.f32 %v1006_v17, %v1006_v17  ;;  %v627_v29 = vsel %vm581_vm1, %v1006_v17, 0.0 }
  0xfb   : > { %588 = vst.msk [vmem:[%s1227_s18 + $0x30] sm:$0xff] %vm581_vm1, %v452_v19  ;;  %v625_v24 = vsel %vm581_vm1, %v452_v19, 0.0  ;;  %v691_v25 = vmul.f32 %v452_v19, %v452_v19  ;;  %605 = vst.msk [vmem:[%s1227_s18 + $0xb8] sm:$0xff] %vm581_vm1, %v1284_v21  ;;  %v1293_v26 = vpop.f32.mrb[7].mxu1  ;;  %v701_v19 = vmul.f32 %v1240_v52, %v1240_v52 }
  0xfc   : > { %v626_v27 = vadd.f32 %v625_v24, %v624_v20  ;;  %v727_v28 = vadd.f32 %v726_v22, %v725_v18  ;;  %604 = vst.msk [vmem:[%s1227_s18 + $0xb0] sm:$0xff] %vm581_vm1, %v1293_v26  ;;  %v730_v36 = vsel %vm581_vm1, %v692_v23, 0.0 }
  0xfd   : > { %v728_v30 = vsel %vm581_vm1, %v691_v25, 0.0  ;;  %v1009_v31 = vpop.f32.mrb[8].mxu0 }
  0xfe   : > { %v729_v32 = vadd.f32 %v728_v30, %v727_v28  ;;  %591 = vst.msk [vmem:[%s1227_s18 + $0x48] sm:$0xff] %vm581_vm1, %v1009_v31  ;;  %v462_v33 = vpop.f32.mrb[9].mxu0  ;;  %v628_v34 = vadd.f32 %v627_v29, %v626_v27  ;;  %v1302_v35 = vpop.f32.mrb[8].mxu1  ;;  %v694_v37 = vmul.f32 %v1009_v31, %v1009_v31  ;;  %v631_v43 = vsel %vm581_vm1, %v1009_v31, 0.0 }
  0xff   : > { %590 = vst.msk [vmem:[%s1227_s18 + $0x40] sm:$0xff] %vm581_vm1, %v462_v33  ;;  %v629_v38 = vsel %vm581_vm1, %v462_v33, 0.0  ;;  %v693_v39 = vmul.f32 %v462_v33, %v462_v33  ;;  %607 = vst.msk [vmem:[%s1227_s18 + $0xc8] sm:$0xff] %vm581_vm1, %v1302_v35  ;;  %v1311_v40 = vpop.f32.mrb[9].mxu1 }
 0x100   : > { %v630_v41 = vadd.f32 %v629_v38, %v628_v34  ;;  %v731_v42 = vadd.f32 %v730_v36, %v729_v32  ;;  %606 = vst.msk [vmem:[%s1227_s18 + $0xc0] sm:$0xff] %vm581_vm1, %v1311_v40  ;;  %v734_v51 = vsel %vm581_vm1, %v694_v37, 0.0  ;;  %v645_v32 = vsel %vm581_vm1, %v1240_v52, 0.0 }
 0x101   : > { %v732_v44 = vsel %vm581_vm1, %v693_v39, 0.0  ;;  %v1012_v45 = vpop.f32.mrb[10].mxu0  ;;  %v702_v37 = vmul.f32 %v1232_v49, %v1232_v49  ;;  %v748_v39 = vsel %vm581_vm1, %v701_v19, 0.0  ;;  %v710_v19 = vmul.f32 %v1302_v35, %v1302_v35 }
 0x102   : > { %v733_v46 = vadd.f32 %v732_v44, %v731_v42  ;;  %593 = vst.msk [vmem:[%s1227_s18 + $0x58] sm:$0xff] %vm581_vm1, %v1012_v45  ;;  %v472_v47 = vpop.f32.mrb[11].mxu0  ;;  %v632_v48 = vadd.f32 %v631_v43, %v630_v41  ;;  %v1320_v50 = vpop.f32.mrb[10].mxu1  ;;  %v696_v53 = vmul.f32 %v1012_v45, %v1012_v45  ;;  %v635_v60 = vsel %vm581_vm1, %v1012_v45, 0.0 }
 0x103   : > { %592 = vst.msk [vmem:[%s1227_s18 + $0x50] sm:$0xff] %vm581_vm1, %v472_v47  ;;  %v633_v54 = vsel %vm581_vm1, %v472_v47, 0.0  ;;  %v695_v55 = vmul.f32 %v472_v47, %v472_v47  ;;  %609 = vst.msk [vmem:[%s1227_s18 + $0xd8] sm:$0xff] %vm581_vm1, %v1320_v50  ;;  %v1329_v56 = vpop.f32.mrb[11].mxu1  ;;  %v703_v41 = vmul.f32 %v1257_v63, %v1257_v63  ;;  %v647_v44 = vsel %vm581_vm1, %v1232_v49, 0.0 }
 0x104   : > { %v634_v57 = vadd.f32 %v633_v54, %v632_v48  ;;  %v735_v58 = vadd.f32 %v734_v51, %v733_v46  ;;  %608 = vst.msk [vmem:[%s1227_s18 + $0xd0] sm:$0xff] %vm581_vm1, %v1329_v56  ;;  %v738_v4 = vsel %vm581_vm1, %v696_v53, 0.0  ;;  %v649_v45 = vsel %vm581_vm1, %v1257_v63, 0.0 }
 0x105   : > { %v736_v61 = vsel %vm581_vm1, %v695_v55, 0.0  ;;  %v1015_v62 = vpop.f32.mrb[12].mxu0  ;;  %v750_v48 = vsel %vm581_vm1, %v702_v37, 0.0  ;;  %v704_v51 = vmul.f32 %v1249_v59, %v1249_v59  ;;  %v752_v53 = vsel %vm581_vm1, %v703_v41, 0.0 }
 0x106   : > { %v737_v0 = vadd.f32 %v736_v61, %v735_v58  ;;  %595 = vst.msk [vmem:[%s1227_s18 + $0x68] sm:$0xff] %vm581_vm1, %v1015_v62  ;;  %v482_v1 = vpop.f32.mrb[13].mxu0  ;;  %v636_v2 = vadd.f32 %v635_v60, %v634_v57  ;;  %v1338_v3 = vpop.f32.mrb[12].mxu1  ;;  %v698_v5 = vmul.f32 %v1015_v62, %v1015_v62  ;;  %v639_v13 = vsel %vm581_vm1, %v1015_v62, 0.0 }
 0x107   : > { %594 = vst.msk [vmem:[%s1227_s18 + $0x60] sm:$0xff] %vm581_vm1, %v482_v1  ;;  %v637_v6 = vsel %vm581_vm1, %v482_v1, 0.0  ;;  %v697_v8 = vmul.f32 %v482_v1, %v482_v1  ;;  %611 = vst.msk [vmem:[%s1227_s18 + $0xe8] sm:$0xff] %vm581_vm1, %v1338_v3  ;;  %v1347_v9 = vpop.f32.mrb[13].mxu1  ;;  %v705_v54 = vmul.f32 %v1275_v12, %v1275_v12  ;;  %v651_v49 = vsel %vm581_vm1, %v1249_v59, 0.0 }
 0x108   : > { %v638_v10 = vadd.f32 %v637_v6, %v636_v2  ;;  %v739_v11 = vadd.f32 %v738_v4, %v737_v0  ;;  %610 = vst.msk [vmem:[%s1227_s18 + $0xe0] sm:$0xff] %vm581_vm1, %v1347_v9  ;;  %v742_v22 = vsel %vm581_vm1, %v698_v5, 0.0  ;;  %v653_v63 = vsel %vm581_vm1, %v1275_v12, 0.0 }
 0x109   : > { %v740_v14 = vsel %vm581_vm1, %v697_v8, 0.0  ;;  %v1018_v15 = vpop.f32.mrb[14].mxu0  ;;  %v754_v61 = vsel %vm581_vm1, %v704_v51, 0.0  ;;  %v706_v62 = vmul.f32 %v1266_v7, %v1266_v7  ;;  %v756_v0 = vsel %vm581_vm1, %v705_v54, 0.0 }
 0x10a   : > { %v741_v16 = vadd.f32 %v740_v14, %v739_v11  ;;  %597 = vst.msk [vmem:[%s1227_s18 + $0x78] sm:$0xff] %vm581_vm1, %v1018_v15  ;;  %v492_v17 = vpop.f32.mrb[15].mxu0  ;;  %v640_v18 = vadd.f32 %v639_v13, %v638_v10  ;;  %v1358_v20 = vpop.f32.mrb[14].mxu1  ;;  %v700_v23 = vmul.f32 %v1018_v15, %v1018_v15  ;;  %v643_v30 = vsel %vm581_vm1, %v1018_v15, 0.0 }
 0x10b   : > { %596 = vst.msk [vmem:[%s1227_s18 + $0x70] sm:$0xff] %vm581_vm1, %v492_v17  ;;  %v641_v24 = vsel %vm581_vm1, %v492_v17, 0.0  ;;  %v699_v25 = vmul.f32 %v492_v17, %v492_v17  ;;  %613 = vst.msk [vmem:[%s1227_s18 + $0xf8] sm:$0xff] %vm581_vm1, %v1358_v20  ;;  %v1367_v27 = vpop.f32.mrb[15].mxu1  ;;  %v716_v33 = vmul.f32 %v1358_v20, %v1358_v20  ;;  %v707_v1 = vmul.f32 %v1293_v26, %v1293_v26 }
 0x10c   : > { %v642_v28 = vadd.f32 %v641_v24, %v640_v18  ;;  %v743_v29 = vadd.f32 %v742_v22, %v741_v16  ;;  %612 = vst.msk [vmem:[%s1227_s18 + $0xf0] sm:$0xff] %vm581_vm1, %v1367_v27  ;;  %v746_v38 = vsel %vm581_vm1, %v700_v23, 0.0  ;;  %v655_v59 = vsel %vm581_vm1, %v1266_v7, 0.0 }
 0x10d   : > { %v744_v31 = vsel %vm581_vm1, %v699_v25, 0.0  ;;  %v1385_v42 = vsel %vm581_vm1, %v716_v33, 0.0  ;;  %v657_v12 = vsel %vm581_vm1, %v1293_v26, 0.0  ;;  %v758_v8 = vsel %vm581_vm1, %v706_v62, 0.0 }
 0x10e   : > { %v644_v34 = vadd.f32 %v643_v30, %v642_v28  ;;  %v745_v36 = vadd.f32 %v744_v31, %v743_v29  ;;  %v708_v10 = vmul.f32 %v1284_v21, %v1284_v21  ;;  %v760_v11 = vsel %vm581_vm1, %v707_v1, 0.0 }
 0x10f   : > { %v709_v13 = vmul.f32 %v1311_v40, %v1311_v40  ;;  %v659_v7 = vsel %vm581_vm1, %v1284_v21, 0.0  ;;  %v661_v26 = vsel %vm581_vm1, %v1311_v40, 0.0  ;;  %v711_v23 = vmul.f32 %v1329_v56, %v1329_v56 }
 0x110   : > { %v747_v43 = vadd.f32 %v746_v38, %v745_v36  ;;  %v646_v52 = vadd.f32 %v645_v32, %v644_v34  ;;  %v762_v18 = vsel %vm581_vm1, %v708_v10, 0.0  ;;  %v663_v21 = vsel %vm581_vm1, %v1302_v35, 0.0 }
 0x111   : > { %v764_v22 = vsel %vm581_vm1, %v709_v13, 0.0  ;;  %v665_v40 = vsel %vm581_vm1, %v1329_v56, 0.0  ;;  %v766_v30 = vsel %vm581_vm1, %v710_v19, 0.0  ;;  %v712_v31 = vmul.f32 %v1320_v50, %v1320_v50 }
 0x112   : > { %v749_v46 = vadd.f32 %v748_v39, %v747_v43  ;;  %v648_v47 = vadd.f32 %v647_v44, %v646_v52  ;;  %v768_v32 = vsel %vm581_vm1, %v711_v23, 0.0  ;;  %v713_v33 = vmul.f32 %v1347_v9, %v1347_v9 }
 0x113   : > { %v667_v35 = vsel %vm581_vm1, %v1320_v50, 0.0  ;;  %v669_v56 = vsel %vm581_vm1, %v1347_v9, 0.0  ;;  %v770_v39 = vsel %vm581_vm1, %v712_v31, 0.0  ;;  %v714_v41 = vmul.f32 %v1338_v3, %v1338_v3 }
 0x114   : > { %v650_v55 = vadd.f32 %v649_v45, %v648_v47  ;;  %v751_v57 = vadd.f32 %v750_v48, %v749_v46  ;;  %v772_v43 = vsel %vm581_vm1, %v713_v33, 0.0  ;;  %v715_v52 = vmul.f32 %v1367_v27, %v1367_v27 }
 0x115   : > { %v671_v50 = vsel %vm581_vm1, %v1338_v3, 0.0  ;;  %v673_v9 = vsel %vm581_vm1, %v1367_v27, 0.0  ;;  %v774_v48 = vsel %vm581_vm1, %v714_v41, 0.0 }
 0x116   : > { %v753_v58 = vadd.f32 %v752_v53, %v751_v57  ;;  %v652_v60 = vadd.f32 %v651_v49, %v650_v55  ;;  %v776_v51 = vsel %vm581_vm1, %v715_v52, 0.0  ;;  %v675_v55 = vsel %vm581_vm1, %v1358_v20, 0.0 }
 0x118   : > { %v654_v2 = vadd.f32 %v653_v63, %v652_v60  ;;  %v755_v4 = vadd.f32 %v754_v61, %v753_v58 }
 0x11a   : > { %v757_v5 = vadd.f32 %v756_v0, %v755_v4  ;;  %v656_v6 = vadd.f32 %v655_v59, %v654_v2 }
 0x11c   : > { %v658_v14 = vadd.f32 %v657_v12, %v656_v6  ;;  %v759_v15 = vadd.f32 %v758_v8, %v757_v5 }
 0x11e   : > { %v761_v16 = vadd.f32 %v760_v11, %v759_v15  ;;  %v660_v17 = vadd.f32 %v659_v7, %v658_v14 }
 0x120   : > { %v662_v24 = vadd.f32 %v661_v26, %v660_v17  ;;  %v763_v25 = vadd.f32 %v762_v18, %v761_v16 }
 0x122   : > { %v765_v28 = vadd.f32 %v764_v22, %v763_v25  ;;  %v664_v29 = vadd.f32 %v663_v21, %v662_v24 }
 0x124   : > { %v666_v34 = vadd.f32 %v665_v40, %v664_v29  ;;  %v767_v36 = vadd.f32 %v766_v30, %v765_v28 }
 0x126   : > { %v769_v37 = vadd.f32 %v768_v32, %v767_v36  ;;  %v668_v38 = vadd.f32 %v667_v35, %v666_v34 }
 0x128   : > { %v670_v44 = vadd.f32 %v669_v56, %v668_v38  ;;  %v771_v45 = vadd.f32 %v770_v39, %v769_v37 }
 0x12a   : > { %v773_v46 = vadd.f32 %v772_v43, %v771_v45  ;;  %v672_v47 = vadd.f32 %v671_v50, %v670_v44 }
 0x12c   : > { %v674_v53 = vadd.f32 %v673_v9, %v672_v47  ;;  %v775_v54 = vadd.f32 %v774_v48, %v773_v46 }
 0x12e   : > { %v676_v57 = vadd.f32 %v675_v55, %v674_v53  ;;  %v777_v49 = vadd.f32 %v776_v51, %v775_v54 }
 0x130   : > { %v677_v63 = vrot.slane %v676_v57, 4  ;;  %v779_v3 = vadd.f32 %v1385_v42, %v777_v49 }
 0x132   : > { %v678_v58 = vadd.f32 %v677_v63, %v676_v57  ;;  %v780_v27 = vrot.slane %v779_v3, 4 }
 0x134   : > { %v679_v60 = vrot.slane %v678_v58, 2  ;;  %v781_v61 = vadd.f32 %v780_v27, %v779_v3 }
 0x136   : > { %v680_v62 = vadd.f32 %v679_v60, %v678_v58  ;;  %v782_v0 = vrot.slane %v781_v61, 2 }
 0x138   : > { %v681_v1 = vrot.slane %v680_v62, 1  ;;  %v783_v2 = vadd.f32 %v782_v0, %v781_v61 }
 0x13a   : > { %v682_v20 = vadd.f32 %v681_v1, %v680_v62  ;;  %v784_v4 = vrot.slane %v783_v2, 1 }
 0x13c   : > { %684 = vst.msk [vmem:[%s214_s21] sm:$0x1] %vm683_vm2, %v682_v20  ;;  %v785_v42 = vadd.f32 %v784_v4, %v783_v2 }
 0x13e   : > { %786 = vst.msk [vmem:[%s217_s24] sm:$0x1] %vm683_vm2, %v785_v42 }
 0x13f PF: > { %s15_s15 = sadd.s32 1, %s1083_s15  }
 0x140   : > { %p12_p5 = scmp.ge.s32.totalorder %s15_s15, 4  }
 0x142   :  { %14 = sbr.rel (!%p12_p5) target bundleno = 1 (0x1), region = 82 }

</bundles_post_ra>
